<compile_context>
chip_gen: v6e
topology: v6e:2x2x1
jax: 0.10.0
libtpu: 0.0.40
codegen_flags: <defaults>
</compile_context>

<pallas_src>
import functools

import jax
import jax.numpy as jnp
from jax.experimental import pallas as pl
from jax.experimental.pallas import tpu as pltpu

EPS = 1e-5  # torch.nn.LayerNorm default


def _upsize_conv_kernel(x_ref, pos_ref, w1_ref, b1_ref, w2_ref, b2_ref,
                        g_ref, beta_ref, o_ref, *, seq_len):
    rows = x_ref.shape[0]          # Bt * seq_len flattened rows
    L = seq_len
    f32 = jnp.float32

    x = x_ref[...]                 # (rows, C_in), kept in input dtype for the MXU
    pos = pos_ref[...]             # (rows, 1) int32: position t within each sequence

    def circ_conv(h, w_ref, b_ref):
        # Circular k=3 conv along L (per sequence), channels-last, as 3 MXU matmuls.
        # Shifts are XLU rolls on the flattened rows; sequence-boundary rows are
        # fixed with a second roll + select to get the within-sequence wrap.
        h_prev = pltpu.roll(h, 1 % rows, axis=0)             # row r-1
        h_next = pltpu.roll(h, (rows - 1) % rows, axis=0)    # row r+1
        if rows != L:
            pos_w = jnp.broadcast_to(pos, h.shape)
            h_prev = jnp.where(pos_w == 0,
                               pltpu.roll(h, (rows - L + 1) % rows, axis=0), h_prev)
            h_next = jnp.where(pos_w == (L - 1),
                               pltpu.roll(h, (L - 1) % rows, axis=0), h_next)
        acc = jnp.dot(h_prev, w_ref[0], preferred_element_type=f32)   # tap 0: h[t-1]
        acc += jnp.dot(h, w_ref[1], preferred_element_type=f32)       # tap 1: h[t]
        acc += jnp.dot(h_next, w_ref[2], preferred_element_type=f32)  # tap 2: h[t+1]
        return acc + b_ref[...].astype(f32)

    # conv_token: Conv1d -> ReLU -> Conv1d (operands in input dtype, f32 accumulate)
    h = jnp.maximum(circ_conv(x, w1_ref, b1_ref), 0.0).astype(x.dtype)   # (rows, d_ff)
    y = circ_conv(h, w2_ref, b2_ref)                                     # (rows, d_model) f32

    # LayerNorm over the last dim (biased variance, eps=1e-5 like torch).
    mean = jnp.mean(y, axis=-1, keepdims=True)
    centered = y - mean
    var = jnp.mean(centered * centered, axis=-1, keepdims=True)
    inv = jax.lax.rsqrt(var + EPS)
    out = centered * inv * g_ref[...].astype(f32) + beta_ref[...].astype(f32)

    o_ref[...] = out.astype(o_ref.dtype)


def _pick_batch_tile(B, L, *, target_rows=256, max_rows=512):
    """Sequences per grid step: fill the MXU M dim (Bt*L rows) without blowing
    VMEM, keep >=2 grid steps for megacore when B allows, and respect the
    (8,128) constraint on the row (sublane) block dimension."""
    divisors = [d for d in range(1, B + 1)
                if B % d == 0 and (d == B or (d * L) % 8 == 0) and d * L <= max_rows]
    if not divisors:
        return 1
    multi = [d for d in divisors if B // d >= 2] or divisors
    reaching = [d for d in multi if d * L >= target_rows]
    return min(reaching) if reaching else max(multi)


def upsize_convlayer(x, w1, b1, w2, b2, gamma, beta, *, batch_tile=None):
    """x: [B, L, C_in]; returns [B, L, d_model]."""
    B, L, c_in = x.shape
    d_ff = w1.shape[-1]
    d_model = w2.shape[-1]

    bt = batch_tile if batch_tile is not None else _pick_batch_tile(B, L)
    assert B % bt == 0
    rows = bt * L

    # Flatten batch*seq into the matmul M dimension (free row-major collapse).
    x2 = x.reshape(B * L, c_in)
    # Position of each row within its sequence (for the circular-wrap fixup).
    pos = (jnp.arange(B * L, dtype=jnp.int32) % L).reshape(B * L, 1)

    # Biases / layernorm params as (1, C) rows for clean VMEM layout.
    b1_r = b1.reshape(1, d_ff)
    b2_r = b2.reshape(1, d_model)
    g_r = gamma.reshape(1, d_model)
    be_r = beta.reshape(1, d_model)

    const = lambda shape: pl.BlockSpec(shape, lambda i: (0,) * len(shape))
    kernel = functools.partial(_upsize_conv_kernel, seq_len=L)

    out2 = pl.pallas_call(
        kernel,
        out_shape=jax.ShapeDtypeStruct((B * L, d_model), x.dtype),
        grid_spec=pltpu.PrefetchScalarGridSpec(
            num_scalar_prefetch=0,
            grid=(B // bt,),
            in_specs=[
                pl.BlockSpec((rows, c_in), lambda i: (i, 0)),
                pl.BlockSpec((rows, 1), lambda i: (i, 0)),
                const((3, c_in, d_ff)),
                const((1, d_ff)),
                const((3, d_ff, d_model)),
                const((1, d_model)),
                const((1, d_model)),
                const((1, d_model)),
            ],
            out_specs=pl.BlockSpec((rows, d_model), lambda i: (i, 0)),
        ),
        compiler_params=pltpu.CompilerParams(
            dimension_semantics=("parallel",),
            vmem_limit_bytes=64 * 1024 * 1024,
        ),
    )(x2, pos, w1, b1_r, w2, b2_r, g_r, be_r)

    return out2.reshape(B, L, d_model)


def reference_forward(x, w1, b1, w2, b2, gamma, beta):
    """Pure-JAX reference matching the torch module (channels-last)."""
    def circ_conv(h, w, b):
        hp = jnp.roll(h, 1, axis=1)
        hn = jnp.roll(h, -1, axis=1)
        return hp @ w[0] + h @ w[1] + hn @ w[2] + b

    h = jax.nn.relu(circ_conv(x, w1, b1))
    y = circ_conv(h, w2, b2)
    mean = y.mean(-1, keepdims=True)
    var = ((y - mean) ** 2).mean(-1, keepdims=True)
    return (y - mean) / jnp.sqrt(var + EPS) * gamma + beta


if __name__ == "__main__":
    # Module hyperparams (small, consistent with __init__):
    d_model, d_ff, fd_num = 32, 64, 1
    c_in = d_model // (2 ** fd_num)          # in_channels of the first conv
    B, L = 4, 16                             # batch, sequence length

    key = jax.random.PRNGKey(0)
    k_x, k_w1, k_b1, k_w2, k_b2 = jax.random.split(key, 5)

    x = jax.random.normal(k_x, (B, L, c_in), dtype=jnp.float32)

    # Synthetic parameters (torch shapes: W1 [d_ff, c_in, 3], W2 [d_model, d_ff, 3];
    # stored here channels-last as [3, in, out]).
    w1 = jax.random.normal(k_w1, (3, c_in, d_ff), dtype=jnp.float32) * 0.1
    b1 = jax.random.normal(k_b1, (d_ff,), dtype=jnp.float32) * 0.1
    w2 = jax.random.normal(k_w2, (3, d_ff, d_model), dtype=jnp.float32) * 0.1
    b2 = jax.random.normal(k_b2, (d_model,), dtype=jnp.float32) * 0.1
    gamma = jnp.ones((d_model,), dtype=jnp.float32)
    beta = jnp.zeros((d_model,), dtype=jnp.float32)

    out = upsize_convlayer(x, w1, b1, w2, b2, gamma, beta)
    out = jax.block_until_ready(out)

    ref = reference_forward(x, w1, b1, w2, b2, gamma, beta)
    assert out.shape == (B, L, d_model)
    assert jnp.allclose(out, ref, atol=1e-4, rtol=1e-4), "mismatch vs reference"

    print("KERNEL_OK")
</pallas_src>

<mosaic_0001>
module attributes {stable_mosaic.version = 11 : i64} {
  func.func @_upsize_conv_kernel(%arg0: i32, %arg1: memref<32x16xf32, #tpu.memory_space<vmem>>, %arg2: memref<32x1xi32, #tpu.memory_space<vmem>>, %arg3: memref<3x16x64xf32, #tpu.memory_space<vmem>>, %arg4: memref<1x64xf32, #tpu.memory_space<vmem>>, %arg5: memref<3x64x32xf32, #tpu.memory_space<vmem>>, %arg6: memref<1x32xf32, #tpu.memory_space<vmem>>, %arg7: memref<1x32xf32, #tpu.memory_space<vmem>>, %arg8: memref<1x32xf32, #tpu.memory_space<vmem>>, %arg9: memref<32x32xf32, #tpu.memory_space<vmem>>) attributes {dimension_semantics = [#tpu.dimension_semantics<parallel>], iteration_bounds = array<i64: 2>, scalar_prefetch = 0 : i64, scratch_operands = 0 : i64, tpu.core_type = #tpu.core_type<tc>, window_params = [{transform_indices = @transform_0, window_bounds = array<i64: 32, 16>}, {transform_indices = @transform_1, window_bounds = array<i64: 32, 1>}, {pipeline_mode = #tpu.pipeline_mode<synchronous>, transform_indices = @transform_2, window_bounds = array<i64: 3, 16, 64>}, {pipeline_mode = #tpu.pipeline_mode<synchronous>, transform_indices = @transform_3, window_bounds = array<i64: 1, 64>}, {pipeline_mode = #tpu.pipeline_mode<synchronous>, transform_indices = @transform_4, window_bounds = array<i64: 3, 64, 32>}, {pipeline_mode = #tpu.pipeline_mode<synchronous>, transform_indices = @transform_5, window_bounds = array<i64: 1, 32>}, {pipeline_mode = #tpu.pipeline_mode<synchronous>, transform_indices = @transform_6, window_bounds = array<i64: 1, 32>}, {pipeline_mode = #tpu.pipeline_mode<synchronous>, transform_indices = @transform_7, window_bounds = array<i64: 1, 32>}, {transform_indices = @transform_8, window_bounds = array<i64: 32, 32>}]} {
    %c0 = arith.constant 0 : index
    %c0_0 = arith.constant 0 : index
    %0 = vector.load %arg1[%c0, %c0_0] : memref<32x16xf32, #tpu.memory_space<vmem>>, vector<32x16xf32>
    %c0_1 = arith.constant 0 : index
    %c0_2 = arith.constant 0 : index
    %1 = vector.load %arg2[%c0_1, %c0_2] : memref<32x1xi32, #tpu.memory_space<vmem>>, vector<32x1xi32>
    %c1_i32 = arith.constant 1 : i32
    %2 = tpu.dynamic_rotate %0 by %c1_i32 dim 0 : vector<32x16xf32>, i32 -> vector<32x16xf32>
    %c31_i32 = arith.constant 31 : i32
    %3 = tpu.dynamic_rotate %0 by %c31_i32 dim 0 : vector<32x16xf32>, i32 -> vector<32x16xf32>
    %4 = vector.shape_cast %1 : vector<32x1xi32> to vector<32x1xi32>
    %5 = vector.broadcast %4 : vector<32x1xi32> to vector<32x16xi32>
    %c0_i32 = arith.constant 0 : i32
    %6 = vector.broadcast %c0_i32 : i32 to vector<32x16xi32>
    %7 = arith.cmpi eq, %5, %6 : vector<32x16xi32>
    %c17_i32 = arith.constant 17 : i32
    %8 = tpu.dynamic_rotate %0 by %c17_i32 dim 0 : vector<32x16xf32>, i32 -> vector<32x16xf32>
    %9 = arith.select %7, %8, %2 : vector<32x16xi1>, vector<32x16xf32>
    %c15_i32 = arith.constant 15 : i32
    %10 = vector.broadcast %c15_i32 : i32 to vector<32x16xi32>
    %11 = arith.cmpi eq, %5, %10 : vector<32x16xi32>
    %c15_i32_3 = arith.constant 15 : i32
    %12 = tpu.dynamic_rotate %0 by %c15_i32_3 dim 0 : vector<32x16xf32>, i32 -> vector<32x16xf32>
    %13 = arith.select %11, %12, %3 : vector<32x16xi1>, vector<32x16xf32>
    %c0_4 = arith.constant 0 : index
    %c0_5 = arith.constant 0 : index
    %c0_6 = arith.constant 0 : index
    %14 = vector.load %arg3[%c0_4, %c0_5, %c0_6] : memref<3x16x64xf32, #tpu.memory_space<vmem>>, vector<1x16x64xf32>
    %15 = vector.shape_cast %14 : vector<1x16x64xf32> to vector<16x64xf32>
    %cst = arith.constant dense<0.000000e+00> : vector<32x64xf32>
    %16 = tpu.matmul %9, %15, %cst {dimension_numbers = #tpu.dot_dimension_numbers<[1], [0], [0], [1], [0, 0, 1, 1], [], []>} : vector<32x16xf32>, vector<16x64xf32>, vector<32x64xf32> -> vector<32x64xf32>
    %c1 = arith.constant 1 : index
    %c0_7 = arith.constant 0 : index
    %c0_8 = arith.constant 0 : index
    %17 = vector.load %arg3[%c1, %c0_7, %c0_8] : memref<3x16x64xf32, #tpu.memory_space<vmem>>, vector<1x16x64xf32>
    %18 = vector.shape_cast %17 : vector<1x16x64xf32> to vector<16x64xf32>
    %cst_9 = arith.constant dense<0.000000e+00> : vector<32x64xf32>
    %19 = tpu.matmul %0, %18, %cst_9 {dimension_numbers = #tpu.dot_dimension_numbers<[1], [0], [0], [1], [0, 0, 1, 1], [], []>} : vector<32x16xf32>, vector<16x64xf32>, vector<32x64xf32> -> vector<32x64xf32>
    %20 = arith.addf %16, %19 : vector<32x64xf32>
    %c2 = arith.constant 2 : index
    %c0_10 = arith.constant 0 : index
    %c0_11 = arith.constant 0 : index
    %21 = vector.load %arg3[%c2, %c0_10, %c0_11] : memref<3x16x64xf32, #tpu.memory_space<vmem>>, vector<1x16x64xf32>
    %22 = vector.shape_cast %21 : vector<1x16x64xf32> to vector<16x64xf32>
    %cst_12 = arith.constant dense<0.000000e+00> : vector<32x64xf32>
    %23 = tpu.matmul %13, %22, %cst_12 {dimension_numbers = #tpu.dot_dimension_numbers<[1], [0], [0], [1], [0, 0, 1, 1], [], []>} : vector<32x16xf32>, vector<16x64xf32>, vector<32x64xf32> -> vector<32x64xf32>
    %24 = arith.addf %20, %23 : vector<32x64xf32>
    %c0_13 = arith.constant 0 : index
    %c0_14 = arith.constant 0 : index
    %25 = vector.load %arg4[%c0_13, %c0_14] : memref<1x64xf32, #tpu.memory_space<vmem>>, vector<1x64xf32>
    %26 = vector.broadcast %25 : vector<1x64xf32> to vector<32x64xf32>
    %27 = arith.addf %24, %26 : vector<32x64xf32>
    %cst_15 = arith.constant 0.000000e+00 : f32
    %28 = vector.broadcast %cst_15 : f32 to vector<32x64xf32>
    %29 = arith.maximumf %27, %28 : vector<32x64xf32>
    %c1_i32_16 = arith.constant 1 : i32
    %30 = tpu.dynamic_rotate %29 by %c1_i32_16 dim 0 : vector<32x64xf32>, i32 -> vector<32x64xf32>
    %c31_i32_17 = arith.constant 31 : i32
    %31 = tpu.dynamic_rotate %29 by %c31_i32_17 dim 0 : vector<32x64xf32>, i32 -> vector<32x64xf32>
    %32 = vector.shape_cast %1 : vector<32x1xi32> to vector<32x1xi32>
    %33 = vector.broadcast %32 : vector<32x1xi32> to vector<32x64xi32>
    %c0_i32_18 = arith.constant 0 : i32
    %34 = vector.broadcast %c0_i32_18 : i32 to vector<32x64xi32>
    %35 = arith.cmpi eq, %33, %34 : vector<32x64xi32>
    %c17_i32_19 = arith.constant 17 : i32
    %36 = tpu.dynamic_rotate %29 by %c17_i32_19 dim 0 : vector<32x64xf32>, i32 -> vector<32x64xf32>
    %37 = arith.select %35, %36, %30 : vector<32x64xi1>, vector<32x64xf32>
    %c15_i32_20 = arith.constant 15 : i32
    %38 = vector.broadcast %c15_i32_20 : i32 to vector<32x64xi32>
    %39 = arith.cmpi eq, %33, %38 : vector<32x64xi32>
    %c15_i32_21 = arith.constant 15 : i32
    %40 = tpu.dynamic_rotate %29 by %c15_i32_21 dim 0 : vector<32x64xf32>, i32 -> vector<32x64xf32>
    %41 = arith.select %39, %40, %31 : vector<32x64xi1>, vector<32x64xf32>
    %c0_22 = arith.constant 0 : index
    %c0_23 = arith.constant 0 : index
    %c0_24 = arith.constant 0 : index
    %42 = vector.load %arg5[%c0_22, %c0_23, %c0_24] : memref<3x64x32xf32, #tpu.memory_space<vmem>>, vector<1x64x32xf32>
    %43 = vector.shape_cast %42 : vector<1x64x32xf32> to vector<64x32xf32>
    %cst_25 = arith.constant dense<0.000000e+00> : vector<32x32xf32>
    %44 = tpu.matmul %37, %43, %cst_25 {dimension_numbers = #tpu.dot_dimension_numbers<[1], [0], [0], [1], [0, 0, 1, 1], [], []>} : vector<32x64xf32>, vector<64x32xf32>, vector<32x32xf32> -> vector<32x32xf32>
    %c1_26 = arith.constant 1 : index
    %c0_27 = arith.constant 0 : index
    %c0_28 = arith.constant 0 : index
    %45 = vector.load %arg5[%c1_26, %c0_27, %c0_28] : memref<3x64x32xf32, #tpu.memory_space<vmem>>, vector<1x64x32xf32>
    %46 = vector.shape_cast %45 : vector<1x64x32xf32> to vector<64x32xf32>
    %cst_29 = arith.constant dense<0.000000e+00> : vector<32x32xf32>
    %47 = tpu.matmul %29, %46, %cst_29 {dimension_numbers = #tpu.dot_dimension_numbers<[1], [0], [0], [1], [0, 0, 1, 1], [], []>} : vector<32x64xf32>, vector<64x32xf32>, vector<32x32xf32> -> vector<32x32xf32>
    %48 = arith.addf %44, %47 : vector<32x32xf32>
    %c2_30 = arith.constant 2 : index
    %c0_31 = arith.constant 0 : index
    %c0_32 = arith.constant 0 : index
    %49 = vector.load %arg5[%c2_30, %c0_31, %c0_32] : memref<3x64x32xf32, #tpu.memory_space<vmem>>, vector<1x64x32xf32>
    %50 = vector.shape_cast %49 : vector<1x64x32xf32> to vector<64x32xf32>
    %cst_33 = arith.constant dense<0.000000e+00> : vector<32x32xf32>
    %51 = tpu.matmul %41, %50, %cst_33 {dimension_numbers = #tpu.dot_dimension_numbers<[1], [0], [0], [1], [0, 0, 1, 1], [], []>} : vector<32x64xf32>, vector<64x32xf32>, vector<32x32xf32> -> vector<32x32xf32>
    %52 = arith.addf %48, %51 : vector<32x32xf32>
    %c0_34 = arith.constant 0 : index
    %c0_35 = arith.constant 0 : index
    %53 = vector.load %arg6[%c0_34, %c0_35] : memref<1x32xf32, #tpu.memory_space<vmem>>, vector<1x32xf32>
    %54 = vector.broadcast %53 : vector<1x32xf32> to vector<32x32xf32>
    %55 = arith.addf %52, %54 : vector<32x32xf32>
    %cst_36 = arith.constant dense<0.000000e+00> : vector<32xf32>
    %56 = vector.multi_reduction <add>, %55, %cst_36 [1] : vector<32x32xf32> to vector<32xf32>
    %57 = vector.shape_cast %56 : vector<32xf32> to vector<32x1xf32>
    %cst_37 = arith.constant 3.200000e+01 : f32
    %58 = vector.broadcast %cst_37 : f32 to vector<32x1xf32>
    %59 = arith.divf %57, %58 : vector<32x1xf32>
    %60 = vector.broadcast %59 : vector<32x1xf32> to vector<32x32xf32>
    %61 = arith.subf %55, %60 : vector<32x32xf32>
    %62 = arith.mulf %61, %61 : vector<32x32xf32>
    %cst_38 = arith.constant dense<0.000000e+00> : vector<32xf32>
    %63 = vector.multi_reduction <add>, %62, %cst_38 [1] : vector<32x32xf32> to vector<32xf32>
    %64 = vector.shape_cast %63 : vector<32xf32> to vector<32x1xf32>
    %cst_39 = arith.constant 3.200000e+01 : f32
    %65 = vector.broadcast %cst_39 : f32 to vector<32x1xf32>
    %66 = arith.divf %64, %65 : vector<32x1xf32>
    %cst_40 = arith.constant 9.99999974E-6 : f32
    %67 = vector.broadcast %cst_40 : f32 to vector<32x1xf32>
    %68 = arith.addf %66, %67 : vector<32x1xf32>
    %69 = math.rsqrt %68 : vector<32x1xf32>
    %70 = vector.broadcast %69 : vector<32x1xf32> to vector<32x32xf32>
    %71 = arith.mulf %61, %70 : vector<32x32xf32>
    %c0_41 = arith.constant 0 : index
    %c0_42 = arith.constant 0 : index
    %72 = vector.load %arg7[%c0_41, %c0_42] : memref<1x32xf32, #tpu.memory_space<vmem>>, vector<1x32xf32>
    %73 = vector.broadcast %72 : vector<1x32xf32> to vector<32x32xf32>
    %74 = arith.mulf %71, %73 : vector<32x32xf32>
    %c0_43 = arith.constant 0 : index
    %c0_44 = arith.constant 0 : index
    %75 = vector.load %arg8[%c0_43, %c0_44] : memref<1x32xf32, #tpu.memory_space<vmem>>, vector<1x32xf32>
    %76 = vector.broadcast %75 : vector<1x32xf32> to vector<32x32xf32>
    %77 = arith.addf %74, %76 : vector<32x32xf32>
    %c0_45 = arith.constant 0 : index
    %c0_46 = arith.constant 0 : index
    %78 = vector.load %arg9[%c0_45, %c0_46] : memref<32x32xf32, #tpu.memory_space<vmem>>, vector<32x32xf32>
    tpu.vector_store %arg9[%c0_45, %c0_46], %77 {strides = array<i32>} : memref<32x32xf32, #tpu.memory_space<vmem>>, vector<32x32xf32>,
    return
  }
  func.func @transform_0(%arg0: i32) -> (i32, i32) {
    %c0_i32 = arith.constant 0 : i32
    %c0_i32_0 = arith.constant 0 : i32
    return %arg0, %c0_i32 : i32, i32
  }
  func.func @transform_1(%arg0: i32) -> (i32, i32) {
    %c0_i32 = arith.constant 0 : i32
    %c0_i32_0 = arith.constant 0 : i32
    return %arg0, %c0_i32 : i32, i32
  }
  func.func @transform_2(%arg0: i32) -> (i32, i32, i32) {
    %c0_i32 = arith.constant 0 : i32
    %c0_i32_0 = arith.constant 0 : i32
    %c0_i32_1 = arith.constant 0 : i32
    %c0_i32_2 = arith.constant 0 : i32
    return %c0_i32, %c0_i32_0, %c0_i32_1 : i32, i32, i32
  }
  func.func @transform_3(%arg0: i32) -> (i32, i32) {
    %c0_i32 = arith.constant 0 : i32
    %c0_i32_0 = arith.constant 0 : i32
    %c0_i32_1 = arith.constant 0 : i32
    return %c0_i32, %c0_i32_0 : i32, i32
  }
  func.func @transform_4(%arg0: i32) -> (i32, i32, i32) {
    %c0_i32 = arith.constant 0 : i32
    %c0_i32_0 = arith.constant 0 : i32
    %c0_i32_1 = arith.constant 0 : i32
    %c0_i32_2 = arith.constant 0 : i32
    return %c0_i32, %c0_i32_0, %c0_i32_1 : i32, i32, i32
  }
  func.func @transform_5(%arg0: i32) -> (i32, i32) {
    %c0_i32 = arith.constant 0 : i32
    %c0_i32_0 = arith.constant 0 : i32
    %c0_i32_1 = arith.constant 0 : i32
    return %c0_i32, %c0_i32_0 : i32, i32
  }
  func.func @transform_6(%arg0: i32) -> (i32, i32) {
    %c0_i32 = arith.constant 0 : i32
    %c0_i32_0 = arith.constant 0 : i32
    %c0_i32_1 = arith.constant 0 : i32
    return %c0_i32, %c0_i32_0 : i32, i32
  }
  func.func @transform_7(%arg0: i32) -> (i32, i32) {
    %c0_i32 = arith.constant 0 : i32
    %c0_i32_0 = arith.constant 0 : i32
    %c0_i32_1 = arith.constant 0 : i32
    return %c0_i32, %c0_i32_0 : i32, i32
  }
  func.func @transform_8(%arg0: i32) -> (i32, i32) {
    %c0_i32 = arith.constant 0 : i32
    %c0_i32_0 = arith.constant 0 : i32
    return %arg0, %c0_i32 : i32, i32
  }
}

</mosaic_0001>

<bundles_post_ra>
// kernel: tpu_custom_call.1
= control target key start
LH: loop header
LB: loop body
LE: loop exit
PB: predicated region body
PF: predicated region fallthrough
CT: control target
= control target key end

     0   :  { %s1495_s27 = smov 0   ;;  %s1742_s0 = inlined_call_operand.vmem [shape: f32[64,16], index: 0, kind: input, shape index: {}]   ;;  %s1743_s1 = inlined_call_operand.vmem [shape: s32[64,1], index: 1, kind: input, shape index: {}]   ;;  %s1744_s2 = inlined_call_operand.vmem [shape: f32[3,16,64], index: 2, kind: input, shape index: {}]   ;;  %s1745_s3 = inlined_call_operand.vmem [shape: f32[1,64], index: 3, kind: input, shape index: {}]   ;;  %s1746_s4 = inlined_call_operand.vmem [shape: f32[3,64,32], index: 4, kind: input, shape index: {}]   ;;  %s1747_s5 = inlined_call_operand.vmem [shape: f32[1,32], index: 5, kind: input, shape index: {}]   ;;  %s1748_s6 = inlined_call_operand.vmem [shape: f32[1,32], index: 6, kind: input, shape index: {}]   ;;  %s1749_s7 = inlined_call_operand.vmem [shape: f32[1,32], index: 7, kind: input, shape index: {}]   ;;  %s1750_s8 = inlined_call_operand.vmem [shape: f32[64,32], index: 8, kind: output, shape index: {}]  }
   0x1 LB: > { %s1211_s28 = sadd.s32 4294967295, %s1447_s27   ;;  %p1215_p0 = scmp.ge.s32.totalorder %s1447_s27, 1  ;;  %s1447_s27 = sphi %s1495_s27, %s18_s27  }
   0x2   : > { %p274_p1 = scmp.lt.s32.totalorder %s1447_s27, 3 }
   0x4   : > { %p275_p2 = pnand %p1215_p0, %p274_p1 }
   0x5   : > { %s1216_s29 = sshll.u32 (!%p275_p2), %s1211_s28, 2 }
   0x6   : > { %278 = sbr.rel (%p275_p2) target bundleno = 882 (0x372), region = 52  ;;  %p314_p3 = scmp.lt.s32.totalorder (!%p275_p2), %s1216_s29, 7 }
   0xb   : > { %v1223_v0 = vld [vmem:[%s1744_s2 + $0x18] sm:$0xff]  ;;  %v343_v1 = vlaneseq  ;;  %v1449_v2 = vmov 0   ;;  %v1222_v3 = vld [vmem:[%s1744_s2 + $0x10] sm:$0xff]  ;;  %s1752_s29 = smov (!%p314_p3, %s1216_s29), 7  ;;  %v1233_v4 = vld [vmem:[%s1744_s2 + $0x28] sm:$0xff]  ;;  %vm392_vm0 = vcmask 130048  }
   0xc   : > { %1431 = vset.pattern.permute.xlu0 %v1449_v2  ;;  %1432 = vset.pattern.permute.xlu1 %v1449_v2  ;;  %v388_v5 = vld [vmem:[%s1744_s2 + $0x8] sm:$0xff]  ;;  %s1517_s16 = sshll.u32 %s1752_s29, 3  ;;  %v1232_v23 = vld [vmem:[%s1744_s2 + $0x20] sm:$0xff]  ;;  %v1246_v33 = vld [vmem:[%s1746_s4 + $0x78] sm:$0xff]  ;;  %vm747_vm11 = vcmask 523264   ;;  %vm1063_vm12 = vcmask 261120  }
   0xd   : > { %1326 = vmatprep.subr.mxu0 %v1223_v0  ;;  %v1515_v6 = vshrl.u32 %v343_v1, 7  ;;  %1336 = vmatprep.subr.mxu1 %v388_v5  ;;  %s323_s19 = scalar_lea.vmem %s1743_s1, %s1517_s16  ;;  %s317_s22 = scalar_lea.vmem %s1742_s0, %s1517_s16  ;;  %v387_v24 = vld [vmem:[%s1744_s2] sm:$0xff]  ;;  %v1245_v46 = vld [vmem:[%s1746_s4 + $0x70] sm:$0xff]  ;;  %v1244_v47 = vld [vmem:[%s1746_s4 + $0x68] sm:$0xff] }
   0xe   : > { %1327 = vmatpush3.msra.mxu0 %v1223_v0  ;;  %1337 = vmatpush3.msra.mxu1 %v388_v5  ;;  %v335_v7 = vld [vmem:[%s323_s19] sm:$0xff]  ;;  %v337_v8 = vld [vmem:[%s323_s19 + $0x10] sm:$0xff]  ;;  %v336_v9 = vld [vmem:[%s323_s19 + $0x8] sm:$0xff]  ;;  %s329_s25 = scalar_lea.vmem %s1750_s8, %s1517_s16 }
   0xf   : > { %1328 = vmatprep.subr.mxu0 %v1222_v3  ;;  %360 = vperm.xlu0 %1431, %v335_v7   ;;  %v338_v10 = vld [vmem:[%s323_s19 + $0x18] sm:$0xff]  ;;  %v331_v11 = vld [vmem:[%s317_s22] sm:$0xff]  ;;  %v332_v12 = vld [vmem:[%s317_s22 + $0x8] sm:$0xff]  ;;  %vm345_vm1 = vcmp.lt.s32.totalorder %v1515_v6, 1  ;;  %vm354_vm2 = vcmp.lt.s32.totalorder %v1515_v6, 7 }
  0x10   : > { %1329 = vmatpush3.msra.mxu0 %v1222_v3  ;;  %366 = vperm.xlu1 %1432, %v337_v8   ;;  %v339_v13 = vrot.slane %v331_v11, 7  ;;  %v350_v14 = vrot.slane %v331_v11, 1  ;;  %v340_v15 = vrot.slane %v332_v12, 7  ;;  %v351_v16 = vrot.slane %v332_v12, 1  ;;  %v333_v17 = vld [vmem:[%s317_s22 + $0x10] sm:$0xff]  ;;  %v334_v18 = vld [vmem:[%s317_s22 + $0x18] sm:$0xff] }
  0x11   : > { %1346 = vmatprep.subr.mxu0 %v1233_v4  ;;  %1330 = vmatprep.mubr.msk.f32.mxu0 %vm392_vm0, %v331_v11  ;;  %v341_v19 = vrot.slane %v333_v17, 7  ;;  %v352_v20 = vrot.slane %v333_v17, 1  ;;  %v342_v21 = vrot.slane %v334_v18, 7  ;;  %v353_v22 = vrot.slane %v334_v18, 1  ;;  %v1243_v48 = vld [vmem:[%s1746_s4 + $0x60] sm:$0xff]  ;;  %v1242_v49 = vld [vmem:[%s1746_s4 + $0x58] sm:$0xff] }
  0x12   : > { %1331 = vmatmul.mubr.msk.f32.vlgmr.msra.gmra.mxu0 %vm392_vm0, %v332_v12  ;;  %v357_v25 = vsel %vm354_vm2, %v350_v14, %v351_v16  ;;  %v348_v26 = vsel %vm345_vm1, %v339_v13, %v340_v15  ;;  %1338 = vmatprep.subr.mxu1 %v387_v24  ;;  %v737_v50 = vld [vmem:[%s1746_s4 + $0x38] sm:$0xff]  ;;  %v1241_v51 = vld [vmem:[%s1746_s4 + $0x50] sm:$0xff]  ;;  %v1240_v53 = vld [vmem:[%s1746_s4 + $0x48] sm:$0xff] }
  0x13   : > { %1333 = vmatprep.mubr.msk.f32.mxu0 %vm392_vm0, %v333_v17  ;;  %1347 = vmatpush3.msra.mxu0 %v1233_v4  ;;  %v347_v27 = vsel %vm345_vm1, %v340_v15, %v341_v19  ;;  %v349_v28 = vsel %vm345_vm1, %v342_v21, %v339_v13  ;;  %v355_v29 = vsel %vm354_vm2, %v352_v20, %v353_v22  ;;  %v736_v52 = vld [vmem:[%s1746_s4 + $0x30] sm:$0xff]  ;;  %v735_v54 = vld [vmem:[%s1746_s4 + $0x28] sm:$0xff]  ;;  %v1239_v55 = vld [vmem:[%s1746_s4 + $0x40] sm:$0xff] }
  0x14   : > { %363 = vperm.xlu0 %1431, %v336_v9   ;;  %369 = vperm.xlu1 %1432, %v338_v10   ;;  %v356_v30 = vsel %vm354_vm2, %v351_v16, %v352_v20  ;;  %v358_v31 = vsel %vm354_vm2, %v353_v22, %v350_v14  ;;  %v346_v32 = vsel %vm345_vm1, %v341_v19, %v342_v21  ;;  %v734_v56 = vld [vmem:[%s1746_s4 + $0x20] sm:$0xff]  ;;  %v1262_v57 = vld [vmem:[%s1746_s4 + $0xb8] sm:$0xff]  ;;  %v732_v59 = vld [vmem:[%s1746_s4 + $0x10] sm:$0xff] }
  0x15   : > { %1348 = vmatprep.subr.mxu0 %v1232_v23  ;;  %1339 = vmatpush3.msra.mxu1 %v387_v24  ;;  %v733_v58 = vld [vmem:[%s1746_s4 + $0x18] sm:$0xff]  ;;  %v731_v60 = vld [vmem:[%s1746_s4 + $0x8] sm:$0xff]  ;;  %v730_v61 = vld [vmem:[%s1746_s4] sm:$0xff] }
  0x16   : > { %1334 = vmatmul.mubr.msk.f32.gmra.mxu0 %vm392_vm0, %v334_v18  ;;  %1356 = vmatprep.subr.mxu1 %v1246_v33  ;;  %v1238_v9 = vld [vmem:[%s1745_s3] ss:$0 sm:$0xff] }
  0x17   : > { %1349 = vmatpush3.msra.mxu0 %v1232_v23 }
  0x18   : > { %1378 = vmatprep.subr.mxu0 %v737_v50 }
  0x8a   : > { %v1558_v34 = vpop.permute.xlu0 %360 }
  0x8b   : > { %v1560_v35 = vpop.permute.xlu1 %366  ;;  %vm371_vm3 = vcmp.eq.s32.totalorder %v1558_v34, 0  ;;  %vm379_vm4 = vcmp.eq.s32.totalorder %v1558_v34, 15 }
  0x8c   : > { %vm373_vm5 = vcmp.eq.s32.totalorder %v1560_v35, 0  ;;  %vm381_vm6 = vcmp.eq.s32.totalorder %v1560_v35, 15  ;;  %v375_v36 = vsel %vm371_vm3, %v347_v27, %v349_v28  ;;  %v383_v37 = vsel %vm379_vm4, %v355_v29, %v357_v25  ;;  %v1267_v35 = vld [vmem:[%s1747_s5] ss:$0 sm:$0xff] }
  0x8d   : > { %v377_v38 = vsel %vm373_vm5, %v349_v28, %v347_v27  ;;  %v385_v39 = vsel %vm381_vm6, %v357_v25, %v355_v29  ;;  %1340 = vmatprep.mubr.msk.f32.mxu1 %vm392_vm0, %v375_v36  ;;  %1350 = vmatprep.mubr.msk.f32.mxu0 %vm392_vm0, %v383_v37 }
  0x8f   : > { %v1576_v40 = vpop.permute.xlu0 %363  ;;  %v1578_v41 = vpop.permute.xlu1 %369 }
  0x90   : > { %vm372_vm7 = vcmp.eq.s32.totalorder %v1576_v40, 0  ;;  %vm380_vm8 = vcmp.eq.s32.totalorder %v1576_v40, 15  ;;  %vm374_vm9 = vcmp.eq.s32.totalorder %v1578_v41, 0  ;;  %vm382_vm10 = vcmp.eq.s32.totalorder %v1578_v41, 15 }
  0x91   : > { %v384_v42 = vsel %vm380_vm8, %v358_v31, %v356_v30  ;;  %v376_v43 = vsel %vm372_vm7, %v346_v32, %v348_v26  ;;  %v378_v44 = vsel %vm374_vm9, %v348_v26, %v346_v32  ;;  %v386_v45 = vsel %vm382_vm10, %v356_v30, %v358_v31  ;;  %v1261_v26 = vld [vmem:[%s1746_s4 + $0xb0] sm:$0xff]  ;;  %v1260_v30 = vld [vmem:[%s1746_s4 + $0xa8] sm:$0xff] }
  0x92   : > { %1341 = vmatmul.mubr.msk.f32.vlgmr.msra.gmra.mxu1 %vm392_vm0, %v376_v43  ;;  %1351 = vmatmul.mubr.msk.f32.vlgmr.msra.gmra.mxu0 %vm392_vm0, %v384_v42  ;;  %v1259_v42 = vld [vmem:[%s1746_s4 + $0xa0] sm:$0xff] }
  0x93   : > { %1343 = vmatprep.mubr.msk.f32.mxu1 %vm392_vm0, %v377_v38  ;;  %1353 = vmatprep.mubr.msk.f32.mxu0 %vm392_vm0, %v385_v39 }
  0x94   : > { %1357 = vmatpush3.msra.mxu1 %v1246_v33  ;;  %1379 = vmatpush3.msra.mxu0 %v737_v50 }
  0x95   : > { %1358 = vmatprep.subr.mxu1 %v1245_v46  ;;  %1380 = vmatprep.subr.mxu0 %v736_v52 }
  0x96   : > { %1344 = vmatmul.mubr.msk.f32.gmra.mxu1 %vm392_vm0, %v378_v44  ;;  %1354 = vmatmul.mubr.msk.f32.gmra.mxu0 %vm392_vm0, %v386_v45 }
  0x97   : > { %1359 = vmatpush3.msra.mxu1 %v1245_v46  ;;  %1381 = vmatpush3.msra.mxu0 %v736_v52 }
  0x98   : > { %1360 = vmatprep.subr.mxu1 %v1244_v47  ;;  %1382 = vmatprep.subr.mxu0 %v735_v54 }
  0x99   : > { %1361 = vmatpush3.msra.mxu1 %v1244_v47  ;;  %1383 = vmatpush3.msra.mxu0 %v735_v54  ;;  %v1258_v47 = vld [vmem:[%s1746_s4 + $0x98] sm:$0xff]  ;;  %v1256_v54 = vld [vmem:[%s1746_s4 + $0x88] sm:$0xff] }
  0x9a   : > { %1362 = vmatprep.subr.mxu1 %v1243_v48  ;;  %1384 = vmatprep.subr.mxu0 %v734_v56 }
  0x9b   : > { %1363 = vmatpush3.msra.mxu1 %v1243_v48  ;;  %1385 = vmatpush3.msra.mxu0 %v734_v56 }
  0x9c   : > { %1364 = vmatprep.subr.mxu1 %v1242_v49  ;;  %1386 = vmatprep.subr.mxu0 %v733_v58 }
  0x9d   : > { %1365 = vmatpush3.msra.mxu1 %v1242_v49  ;;  %1387 = vmatpush3.msra.mxu0 %v733_v58 }
  0x9e   : > { %1366 = vmatprep.subr.mxu1 %v1241_v51  ;;  %1388 = vmatprep.subr.mxu0 %v732_v59 }
  0x9f   : > { %1367 = vmatpush3.msra.mxu1 %v1241_v51  ;;  %1389 = vmatpush3.msra.mxu0 %v732_v59 }
  0xa0   : > { %1368 = vmatprep.subr.mxu1 %v1240_v53  ;;  %1390 = vmatprep.subr.mxu0 %v731_v60 }
  0xa1   : > { %1369 = vmatpush3.msra.mxu1 %v1240_v53  ;;  %1391 = vmatpush3.msra.mxu0 %v731_v60  ;;  %v1257_v53 = vld [vmem:[%s1746_s4 + $0x90] sm:$0xff] }
  0xa2   : > { %1370 = vmatprep.subr.mxu1 %v1239_v55  ;;  %1392 = vmatprep.subr.mxu0 %v730_v61 }
  0xa3   : > { %1371 = vmatpush3.msra.mxu1 %v1239_v55  ;;  %1393 = vmatpush3.msra.mxu0 %v730_v61  ;;  %v1255_v55 = vld [vmem:[%s1746_s4 + $0x80] sm:$0xff] }
  0xa4   : > { %1400 = vmatprep.subr.mxu1 %v1262_v57 }
  0xd2   : > { %v1332_v62 = vpop.f32.mrf.mxu0 }
  0xd4   : > { %v471_v63 = vpop.f32.mrf.mxu0 }
  0xd6   : > { %v1335_v0 = vpop.f32.mrf.mxu0 }
  0xd8   : > { %v481_v1 = vpop.f32.mrf.mxu0 }
 0x152   : > { %v1342_v2 = vpop.f32.mrf.mxu1  ;;  %v1352_v3 = vpop.f32.mrf.mxu0 }
 0x153   : > { %v574_v4 = vadd.f32 %v1342_v2, %v1332_v62 }
 0x154   : > { %v568_v5 = vpop.f32.mrf.mxu1  ;;  %v668_v7 = vpop.f32.mrf.mxu0 }
 0x155   : > { %v688_v8 = vadd.f32 %v1352_v3, %v574_v4  ;;  %v569_v10 = vadd.f32 %v568_v5, %v471_v63 }
 0x156   : > { %v1345_v11 = vpop.f32.mrf.mxu1  ;;  %v1355_v14 = vpop.f32.mrf.mxu0 }
 0x157   : > { %v687_v12 = vadd.f32 %v668_v7, %v569_v10  ;;  %v584_v13 = vadd.f32 %v1345_v11, %v1335_v0  ;;  %v699_v15 = vadd.f32 %v1238_v9, %v688_v8 }
 0x158   : > { %v578_v16 = vpop.f32.mrf.mxu1  ;;  %v678_v22 = vpop.f32.mrf.mxu0 }
 0x159   : > { %v698_v17 = vadd.f32 %v1238_v9, %v687_v12  ;;  %v690_v18 = vadd.f32 %v1355_v14, %v584_v13  ;;  %v579_v19 = vadd.f32 %v578_v16, %v481_v1  ;;  %v703_v23 = vmax.f32 %v699_v15, 0.0 }
 0x15b   : > { %v702_v20 = vmax.f32 %v698_v17, 0.0  ;;  %v701_v21 = vadd.f32 %v1238_v9, %v690_v18  ;;  %v689_v24 = vadd.f32 %v678_v22, %v579_v19  ;;  %v707_v33 = vrot.slane %v703_v23, 7 }
 0x15c   : > { %v715_v36 = vrot.slane %v703_v23, 1 }
 0x15d   : > { %v705_v25 = vmax.f32 %v701_v21, 0.0  ;;  %1372 = vmatprep.mubr.msk.f32.mxu1 %vm747_vm11, %v702_v20  ;;  %v700_v27 = vadd.f32 %v1238_v9, %v689_v24  ;;  %v706_v28 = vrot.slane %v702_v20, 7  ;;  %v714_v29 = vrot.slane %v702_v20, 1 }
 0x15e   : > { %1373 = vmatmul.mubr.msk.f32.vlgmr.msra.gmra.mxu1 %vm747_vm11, %v703_v23 }
 0x15f   : > { %1401 = vmatpush3.msra.mxu1 %v1262_v57  ;;  %v709_v31 = vrot.slane %v705_v25, 7  ;;  %v704_v32 = vmax.f32 %v700_v27, 0.0  ;;  %v717_v37 = vrot.slane %v705_v25, 1  ;;  %v720_v43 = vsel %vm354_vm2, %v714_v29, %v715_v36 }
 0x160   : > { %1402 = vmatprep.subr.mxu1 %v1261_v26  ;;  %v712_v44 = vsel %vm345_vm1, %v706_v28, %v707_v33 }
 0x161   : > { %1403 = vmatpush3.msra.mxu1 %v1261_v26  ;;  %v708_v38 = vrot.slane %v704_v32, 7  ;;  %v716_v39 = vrot.slane %v704_v32, 1  ;;  %1375 = vmatprep.mubr.msk.f32.mxu1 %vm747_vm11, %v704_v32  ;;  %v713_v46 = vsel %vm345_vm1, %v709_v31, %v706_v28  ;;  %v721_v58 = vsel %vm354_vm2, %v717_v37, %v714_v29 }
 0x162   : > { %1404 = vmatprep.subr.mxu1 %v1260_v30  ;;  %1376 = vmatmul.mubr.msk.f32.gmra.mxu1 %vm747_vm11, %v705_v25 }
 0x163   : > { %1405 = vmatpush3.msra.mxu1 %v1260_v30  ;;  %v711_v45 = vsel %vm345_vm1, %v707_v33, %v708_v38  ;;  %v718_v48 = vsel %vm354_vm2, %v716_v39, %v717_v37  ;;  %v710_v49 = vsel %vm345_vm1, %v708_v38, %v709_v31  ;;  %v719_v57 = vsel %vm354_vm2, %v715_v36, %v716_v39 }
 0x164   : > { %1406 = vmatprep.subr.mxu1 %v1259_v42  ;;  %v722_v50 = vsel %vm371_vm3, %v711_v45, %v713_v46  ;;  %v726_v51 = vsel %vm379_vm4, %v718_v48, %v720_v43  ;;  %v723_v52 = vsel %vm372_vm7, %v710_v49, %v712_v44  ;;  %v724_v34 = vsel %vm373_vm5, %v713_v46, %v711_v45 }
 0x165   : > { %1407 = vmatpush3.msra.mxu1 %v1259_v42  ;;  %1394 = vmatprep.mubr.msk.f32.mxu0 %vm747_vm11, %v722_v50  ;;  %v725_v56 = vsel %vm374_vm9, %v712_v44, %v710_v49  ;;  %v727_v59 = vsel %vm380_vm8, %v721_v58, %v719_v57  ;;  %v728_v60 = vsel %vm381_vm6, %v720_v43, %v718_v48 }
 0x166   : > { %1408 = vmatprep.subr.mxu1 %v1258_v47  ;;  %1416 = vmatprep.mubr.msk.f32.mxu1 %vm747_vm11, %v726_v51  ;;  %v729_v61 = vsel %vm382_vm10, %v719_v57, %v721_v58 }
 0x167   : > { %1395 = vmatmul.mubr.msk.f32.vlgmr.msra.gmra.mxu0 %vm747_vm11, %v723_v52  ;;  %1409 = vmatpush3.msra.mxu1 %v1258_v47 }
 0x168   : > { %1397 = vmatprep.mubr.msk.f32.mxu0 %vm747_vm11, %v724_v34  ;;  %1410 = vmatprep.subr.mxu1 %v1257_v53 }
 0x169   : > { %1411 = vmatpush3.msra.mxu1 %v1257_v53 }
 0x16a   : > { %1412 = vmatprep.subr.mxu1 %v1256_v54 }
 0x16b   : > { %1398 = vmatmul.mubr.msk.f32.gmra.mxu0 %vm747_vm11, %v725_v56  ;;  %1413 = vmatpush3.msra.mxu1 %v1256_v54 }
 0x16c   : > { %1414 = vmatprep.subr.mxu1 %v1255_v55 }
 0x16d   : > { %1415 = vmatpush3.msra.mxu1 %v1255_v55 }
 0x16e   : > { %1417 = vmatmul.mubr.msk.f32.vlgmr.msra.gmra.mxu1 %vm747_vm11, %v727_v59 }
 0x16f   : > { %1419 = vmatprep.mubr.msk.f32.mxu1 %vm747_vm11, %v728_v60  ;;  %v1268_v60 = vld [vmem:[%s1748_s6] ss:$0 sm:$0xff] }
 0x172   : > { %1420 = vmatmul.mubr.msk.f32.gmra.mxu1 %vm747_vm11, %v729_v61 }
 0x21e   : > { %v1374_v62 = vpop.f32.mrf.mxu1 }
 0x220   : > { %v826_v63 = vpop.f32.mrf.mxu1 }
 0x222   : > { %v1377_v0 = vpop.f32.mrf.mxu1 }
 0x224   : > { %v836_v2 = vpop.f32.mrf.mxu1 }
 0x227   : > { %v1396_v6 = vpop.f32.mrf.mxu0 }
 0x228   : > { %v929_v3 = vadd.f32 %v1396_v6, %v1374_v62 }
 0x229   : > { %v923_v1 = vpop.f32.mrf.mxu0 }
 0x22a   : > { %v924_v5 = vadd.f32 %v923_v1, %v826_v63 }
 0x22b   : > { %v1399_v40 = vpop.f32.mrf.mxu0 }
 0x22c   : > { %v939_v12 = vadd.f32 %v1399_v40, %v1377_v0  ;;  %v1269_v0 = vld [vmem:[%s1749_s7] ss:$0 sm:$0xff] }
 0x22d   : > { %v933_v8 = vpop.f32.mrf.mxu0 }
 0x22e   : > { %v1418_v4 = vpop.f32.mrf.mxu1  ;;  %v934_v13 = vadd.f32 %v933_v8, %v836_v2 }
 0x22f   : > { %v1049_v7 = vadd.f32 %v1418_v4, %v929_v3 }
 0x230   : > { %v1029_v41 = vpop.f32.mrf.mxu1 }
 0x231   : > { %v1048_v9 = vadd.f32 %v1029_v41, %v924_v5  ;;  %v1060_v10 = vadd.f32 %v1267_v35, %v1049_v7 }
 0x232   : > { %v1421_v11 = vpop.f32.mrf.mxu1 }
 0x233   : > { %v1067_v14 = vsel %vm1063_vm12, %v1060_v10, 0.0  ;;  %v1059_v15 = vadd.f32 %v1267_v35, %v1048_v9  ;;  %v1051_v17 = vadd.f32 %v1421_v11, %v939_v12 }
 0x234   : > { %v1039_v16 = vpop.f32.mrf.mxu1  ;;  %1068 = vadd.xlane.f32.xlu1 %v1067_v14 }
 0x235   : > { %v1050_v18 = vadd.f32 %v1039_v16, %v934_v13  ;;  %v1064_v19 = vsel %vm1063_vm12, %v1059_v15, 0.0  ;;  %v1062_v22 = vadd.f32 %v1267_v35, %v1051_v17 }
 0x236   : > { %1065 = vadd.xlane.f32.xlu0 %v1064_v19 }
 0x237   : > { %v1061_v20 = vadd.f32 %v1267_v35, %v1050_v18  ;;  %v1073_v23 = vsel %vm1063_vm12, %v1062_v22, 0.0 }
 0x239   : > { %v1070_v21 = vsel %vm1063_vm12, %v1061_v20, 0.0 }
 0x23a   : > { %1071 = vadd.xlane.f32.xlu0 %v1070_v21 }
 0x23e   : > { %1074 = vadd.xlane.f32.xlu0 %v1073_v23 }
 0x2bd   : > { %v1069_v24 = vpop.xlane.xlu1 %1068 }
 0x2be   : > { %v1078_v25 = vmul.f32 0.03125, %v1069_v24 }
 0x2bf   : > { %v1066_v26 = vpop.xlane.xlu0 %1065 }
 0x2c0   : > { %v1082_v27 = vsub.f32 %v1060_v10, %v1078_v25  ;;  %v1077_v28 = vmul.f32 0.03125, %v1066_v26 }
 0x2c2   : > { %v1081_v29 = vsub.f32 %v1059_v15, %v1077_v28  ;;  %v1086_v30 = vmul.f32 %v1082_v27, %v1082_v27 }
 0x2c3   : > { %v1072_v31 = vpop.xlane.xlu0 %1071 }
 0x2c4   : > { %v1079_v32 = vmul.f32 0.03125, %v1072_v31  ;;  %v1092_v33 = vsel %vm1063_vm12, %v1086_v30, 0.0  ;;  %v1085_v36 = vmul.f32 %v1081_v29, %v1081_v29 }
 0x2c5   : > { %1093 = vadd.xlane.f32.xlu0 %v1092_v33 }
 0x2c6   : > { %v1083_v37 = vsub.f32 %v1061_v20, %v1079_v32  ;;  %v1089_v38 = vsel %vm1063_vm12, %v1085_v36, 0.0 }
 0x2c7   : > { %1090 = vadd.xlane.f32.xlu1 %v1089_v38  ;;  %v1075_v39 = vpop.xlane.xlu0 %1074 }
 0x2c8   : > { %v1080_v42 = vmul.f32 0.03125, %v1075_v39  ;;  %v1087_v43 = vmul.f32 %v1083_v37, %v1083_v37 }
 0x2ca   : > { %v1084_v44 = vsub.f32 %v1062_v22, %v1080_v42  ;;  %v1095_v45 = vsel %vm1063_vm12, %v1087_v43, 0.0 }
 0x2cb   : > { %1096 = vadd.xlane.f32.xlu1 %v1095_v45 }
 0x2cc   : > { %v1088_v46 = vmul.f32 %v1084_v44, %v1084_v44 }
 0x2ce   : > { %v1098_v47 = vsel %vm1063_vm12, %v1088_v46, 0.0 }
 0x2cf   : > { %1099 = vadd.xlane.f32.xlu0 %v1098_v47 }
 0x34e   : > { %v1094_v48 = vpop.xlane.xlu0 %1093 }
 0x34f   : > { %v1102_v49 = vmul.f32 0.03125, %v1094_v48 }
 0x350   : > { %v1091_v50 = vpop.xlane.xlu1 %1090 }
 0x351   : > { %v1106_v51 = vadd.f32 1e-05, %v1102_v49  ;;  %v1101_v52 = vmul.f32 0.03125, %v1091_v50 }
 0x353   : > { %1433 = vrsqrt.f32 %v1106_v51  ;;  %v1105_v53 = vadd.f32 1e-05, %v1101_v52 }
 0x354   : > { %v1097_v34 = vpop.xlane.xlu1 %1096 }
 0x355   : > { %1435 = vrsqrt.f32 %v1105_v53  ;;  %v1103_v54 = vmul.f32 0.03125, %v1097_v34 }
 0x357   : > { %v1107_v55 = vadd.f32 1e-05, %v1103_v54 }
 0x358   : > { %v1100_v56 = vpop.xlane.xlu0 %1099 }
 0x359   : > { %1437 = vrsqrt.f32 %v1107_v55  ;;  %v1104_v57 = vmul.f32 0.03125, %v1100_v56 }
 0x35b   : > { %v1108_v58 = vadd.f32 1e-05, %v1104_v57 }
 0x35d   : > { %1439 = vrsqrt.f32 %v1108_v58 }
 0x360   : > { %v1434_v59 = vpop.eup %1433 }
 0x361   : > { %v1114_v61 = vmul.f32 %v1434_v59, %v1082_v27 }
 0x362   : > { %v1436_v62 = vpop.eup %1435 }
 0x363   : > { %v1113_v63 = vmul.f32 %v1436_v62, %v1081_v29  ;;  %v1125_v6 = vmul.f32 %v1268_v60, %v1114_v61 }
 0x365   : > { %v1124_v1 = vmul.f32 %v1268_v60, %v1113_v63  ;;  %v1136_v4 = vadd.f32 %v1269_v0, %v1125_v6 }
 0x366   : > { %v1438_v2 = vpop.eup %1437 }
 0x367   : > { %v1135_v40 = vadd.f32 %v1269_v0, %v1124_v1  ;;  %v1115_v3 = vmul.f32 %v1438_v2, %v1083_v37  ;;  %1140 = vst.msk [vmem:[%s329_s25 + $0x8] sm:$0xff] %vm1063_vm12, %v1136_v4 }
 0x369   : > { %1139 = vst.msk [vmem:[%s329_s25] sm:$0xff] %vm1063_vm12, %v1135_v40  ;;  %v1126_v35 = vmul.f32 %v1268_v60, %v1115_v3 }
 0x36a   : > { %v1440_v5 = vpop.eup %1439 }
 0x36b   : > { %v1137_v7 = vadd.f32 %v1269_v0, %v1126_v35  ;;  %v1116_v8 = vmul.f32 %v1440_v5, %v1084_v44 }
 0x36d   : > { %1141 = vst.msk [vmem:[%s329_s25 + $0x10] sm:$0xff] %vm1063_vm12, %v1137_v7  ;;  %v1127_v41 = vmul.f32 %v1268_v60, %v1116_v8 }
 0x36f   : > { %v1138_v9 = vadd.f32 %v1269_v0, %v1127_v41 }
 0x371   : > { %1142 = vst.msk [vmem:[%s329_s25 + $0x18] sm:$0xff] %vm1063_vm12, %v1138_v9 }
 0x372 PF: > { %s18_s27 = sadd.s32 1, %s1447_s27  }
 0x373   : > { %p15_p4 = scmp.ge.s32.totalorder %s18_s27, 4  }
 0x375   :  { %17 = sbr.rel (!%p15_p4) target bundleno = 1 (0x1), region = 89 }

</bundles_post_ra>
